<compile_context>
chip_gen: v7x
topology: tpu7x:2x2x1
jax: 0.10.0
libtpu: 0.0.40
codegen_flags: <defaults>
</compile_context>

<pallas_src>
import jax
import jax.numpy as jnp
from jax.experimental import pallas as pl
from jax.experimental.pallas import tpu as pltpu


def _round_up(x, m):
    return (x + m - 1) // m * m


def _round_down(x, m):
    return (x // m) * m


def _lora_kernel(x_ref, a_ref, b_ref, o_ref):
    # Both matmuls on the MXU with f32 accumulation.  The (TM, rank_p)
    # intermediate is cast back to the weight dtype so the second matmul also
    # issues at input width (no-op for f32 inputs).
    t = jnp.dot(x_ref[...], a_ref[...], preferred_element_type=jnp.float32)
    y = jnp.dot(t.astype(b_ref.dtype), b_ref[...],
                preferred_element_type=jnp.float32)
    o_ref[...] = y.astype(o_ref.dtype)


def _vmem_capacity_bytes():
    # Generation-aware VMEM capacity; conservative fallback = v7x per-TC 64 MiB.
    try:
        cap = int(pltpu.get_tpu_info().vmem_capacity_bytes)
        if cap > 0:
            return cap
    except Exception:
        pass
    return 64 * 1024 * 1024


def _choose_tn(out_dim):
    # Lane-dense output blocks that divide out_dim tightly (waste <= 1 block's
    # masked tail instead of up to 1023 padded lanes).
    if out_dim < 128:
        return out_dim                      # single full (masked) lane block
    out_dim_p = _round_up(out_dim, 128)
    n_j = pl.cdiv(out_dim_p, 1024)
    tn = _round_up(pl.cdiv(out_dim_p, n_j), 128)
    return min(tn, _round_down(out_dim, 128))   # never exceed the array extent


def _choose_tm(M, in_dim, rank_p, tn, x_itemsize, w_itemsize, tile_budget_bytes):
    # Per-grid-step VMEM: double-buffered x and out tiles, double-buffered
    # resident A/B blocks, plus the f32 temporaries inside the kernel body.
    weight_bytes = 2 * in_dim * rank_p * w_itemsize + 2 * rank_p * tn * w_itemsize
    per_row = (2 * in_dim * x_itemsize      # x tile, double buffered
               + 2 * tn * x_itemsize        # out tile, double buffered
               + rank_p * 4                 # f32 intermediate t
               + tn * 4)                    # f32 intermediate y
    avail = max(tile_budget_bytes - weight_bytes, per_row * 8)
    tm = max(8, _round_down(avail // per_row, 8))
    tm = min(tm, 512)                       # HBM-roofline knee (~85% at 512)
    if M < 8:
        return M                            # block == full (tiny) row extent
    # Tighten TM so the trailing block is not nearly empty (same #grid steps).
    n_i = pl.cdiv(M, tm)
    tm = _round_up(pl.cdiv(M, n_i), 8)
    tm = min(tm, _round_down(M, 8))
    return max(tm, 8)


def lora_forward(x, A, B, alpha):
    """alpha * (x @ A @ B). x may be (..., in_dim)."""
    in_dim, rank = A.shape
    rank_b, out_dim = B.shape
    assert rank == rank_b and x.shape[-1] == in_dim

    lead_shape = x.shape[:-1]
    M = 1
    for d in lead_shape:
        M *= d

    x_dtype = x.dtype
    x_itemsize = jnp.dtype(x_dtype).itemsize
    w_itemsize = jnp.dtype(A.dtype).itemsize

    # Fold alpha into A once -> no per-element epilogue, no recompile per alpha.
    A_scaled = (A.astype(jnp.float32) * jnp.float32(alpha)).astype(A.dtype)

    # Zero-pad the rank axis to 128 lanes (A/B are tiny; x/out are untouched).
    rank_p = _round_up(rank, 128)
    if rank_p != rank:
        A_p = jnp.pad(A_scaled, ((0, 0), (0, rank_p - rank)))
        B_p = jnp.pad(B, ((0, rank_p - rank), (0, 0)))
    else:
        A_p, B_p = A_scaled, B

    x2 = x.reshape(M, in_dim)

    cap = _vmem_capacity_bytes()
    tile_budget = int(0.70 * cap)
    vmem_limit = int(0.85 * cap)

    TN = _choose_tn(out_dim)
    TM = _choose_tm(M, in_dim, rank_p, TN, x_itemsize, w_itemsize, tile_budget)

    grid = (pl.cdiv(M, TM), pl.cdiv(out_dim, TN))

    cost = pl.CostEstimate(
        flops=2 * M * rank_p * (in_dim + out_dim),
        transcendentals=0,
        bytes_accessed=(M * (in_dim + out_dim)) * x_itemsize
        + (in_dim * rank_p + rank_p * out_dim) * w_itemsize,
    )

    out = pl.pallas_call(
        _lora_kernel,
        out_shape=jax.ShapeDtypeStruct((M, out_dim), x_dtype),
        grid_spec=pltpu.PrefetchScalarGridSpec(
            num_scalar_prefetch=0,
            grid=grid,
            in_specs=[
                # x tile: varies with i only (re-DMA skipped across j).
                pl.BlockSpec((TM, in_dim), lambda i, j: (i, 0)),
                # A: VMEM-resident for the whole grid.
                pl.BlockSpec((in_dim, rank_p), lambda i, j: (0, 0)),
                # B: resident across i, sliced along out_dim by j.
                pl.BlockSpec((rank_p, TN), lambda i, j: (0, j)),
            ],
            out_specs=pl.BlockSpec((TM, TN), lambda i, j: (i, j)),
        ),
        compiler_params=pltpu.CompilerParams(
            # M axis carries megacore sharding on v7x (avoids duplicated x
            # reads); out_dim axis stays sequential.
            dimension_semantics=("parallel", "arbitrary"),
            vmem_limit_bytes=vmem_limit,
        ),
        cost_estimate=cost,
    )(x2, A_p, B_p)

    return out.reshape(*lead_shape, out_dim)


if __name__ == "__main__":
    # Deterministic parameter init mirroring the PyTorch module:
    #   A ~ randn(in_dim, rank) * (1/sqrt(rank)),  B = zeros(rank, out_dim)
    batch, seq, in_dim, rank, out_dim = 2, 8, 32, 8, 32
    alpha = 4.0

    key = jax.random.PRNGKey(0)
    kx, ka, kb = jax.random.split(key, 3)

    x = jax.random.normal(kx, (batch, seq, in_dim), dtype=jnp.float32)
    std_dev = 1.0 / jnp.sqrt(jnp.float32(rank))
    A = jax.random.normal(ka, (in_dim, rank), dtype=jnp.float32) * std_dev
    B = jnp.zeros((rank, out_dim), dtype=jnp.float32)  # as in module __init__

    out = jax.block_until_ready(lora_forward(x, A, B, alpha))
    ref = alpha * (x @ A @ B)
    assert out.shape == (batch, seq, out_dim)
    assert jnp.allclose(out, ref, atol=1e-5, rtol=1e-5)

    # Extra numeric check with a non-zero B (same forward semantics).
    B_nz = jax.random.normal(kb, (rank, out_dim), dtype=jnp.float32)
    out2 = jax.block_until_ready(lora_forward(x, A, B_nz, alpha))
    ref2 = alpha * (x @ A @ B_nz)
    assert jnp.allclose(out2, ref2, atol=1e-4, rtol=1e-4)

    print("KERNEL_OK")
</pallas_src>

<mosaic_0001>
module attributes {stable_mosaic.version = 11 : i64} {
  func.func @_lora_kernel(%arg0: i32, %arg1: i32, %arg2: memref<16x32xf32, #tpu.memory_space<vmem>>, %arg3: memref<32x128xf32, #tpu.memory_space<vmem>>, %arg4: memref<128x32xf32, #tpu.memory_space<vmem>>, %arg5: memref<16x32xf32, #tpu.memory_space<vmem>>) attributes {dimension_semantics = [#tpu.dimension_semantics<parallel>, #tpu.dimension_semantics<arbitrary>], iteration_bounds = array<i64: 1, 1>, scalar_prefetch = 0 : i64, scratch_operands = 0 : i64, tpu.core_type = #tpu.core_type<tc>, window_params = [{transform_indices = @transform_0, window_bounds = array<i64: 16, 32>}, {pipeline_mode = #tpu.pipeline_mode<synchronous>, transform_indices = @transform_1, window_bounds = array<i64: 32, 128>}, {transform_indices = @transform_2, window_bounds = array<i64: 128, 32>}, {transform_indices = @transform_3, window_bounds = array<i64: 16, 32>}]} {
    %c0 = arith.constant 0 : index
    %c0_0 = arith.constant 0 : index
    %0 = vector.load %arg2[%c0, %c0_0] : memref<16x32xf32, #tpu.memory_space<vmem>>, vector<16x32xf32>
    %c0_1 = arith.constant 0 : index
    %c0_2 = arith.constant 0 : index
    %1 = vector.load %arg3[%c0_1, %c0_2] : memref<32x128xf32, #tpu.memory_space<vmem>>, vector<32x128xf32>
    %cst = arith.constant dense<0.000000e+00> : vector<16x128xf32>
    %2 = tpu.matmul %0, %1, %cst {dimension_numbers = #tpu.dot_dimension_numbers<[1], [0], [0], [1], [0, 0, 1, 1], [], []>} : vector<16x32xf32>, vector<32x128xf32>, vector<16x128xf32> -> vector<16x128xf32>
    %c0_3 = arith.constant 0 : index
    %c0_4 = arith.constant 0 : index
    %3 = vector.load %arg4[%c0_3, %c0_4] : memref<128x32xf32, #tpu.memory_space<vmem>>, vector<128x32xf32>
    %cst_5 = arith.constant dense<0.000000e+00> : vector<16x32xf32>
    %4 = tpu.matmul %2, %3, %cst_5 {dimension_numbers = #tpu.dot_dimension_numbers<[1], [0], [0], [1], [0, 0, 1, 1], [], []>} : vector<16x128xf32>, vector<128x32xf32>, vector<16x32xf32> -> vector<16x32xf32>
    %c0_6 = arith.constant 0 : index
    %c0_7 = arith.constant 0 : index
    %5 = vector.load %arg5[%c0_6, %c0_7] : memref<16x32xf32, #tpu.memory_space<vmem>>, vector<16x32xf32>
    tpu.vector_store %arg5[%c0_6, %c0_7], %4 {strides = array<i32>} : memref<16x32xf32, #tpu.memory_space<vmem>>, vector<16x32xf32>,
    return
  }
  func.func @transform_0(%arg0: i32, %arg1: i32) -> (i32, i32) {
    %c0_i32 = arith.constant 0 : i32
    %c0_i32_0 = arith.constant 0 : i32
    return %arg0, %c0_i32 : i32, i32
  }
  func.func @transform_1(%arg0: i32, %arg1: i32) -> (i32, i32) {
    %c0_i32 = arith.constant 0 : i32
    %c0_i32_0 = arith.constant 0 : i32
    %c0_i32_1 = arith.constant 0 : i32
    return %c0_i32, %c0_i32_0 : i32, i32
  }
  func.func @transform_2(%arg0: i32, %arg1: i32) -> (i32, i32) {
    %c0_i32 = arith.constant 0 : i32
    %c0_i32_0 = arith.constant 0 : i32
    return %c0_i32, %arg1 : i32, i32
  }
  func.func @transform_3(%arg0: i32, %arg1: i32) -> (i32, i32) {
    %c0_i32 = arith.constant 0 : i32
    return %arg0, %arg1 : i32, i32
  }
}

</mosaic_0001>

<bundles_post_ra>
// kernel: tpu_custom_call.1
= control target key start
LH: loop header
LB: loop body
LE: loop exit
PB: predicated region body
PF: predicated region fallthrough
CT: control target
= control target key end

     0   :  { %vm21_vm0 = vcmask 261120   ;;  %s456_s0 = inlined_call_operand.vmem [shape: f32[16,32], index: 0, kind: input, shape index: {}]   ;;  %s457_s1 = inlined_call_operand.vmem [shape: f32[32,128], index: 1, kind: input, shape index: {}]   ;;  %s458_s2 = inlined_call_operand.vmem [shape: f32[128,32], index: 2, kind: input, shape index: {}]   ;;  %s459_s3 = inlined_call_operand.hbm [shape: f32[16,32], index: 3, kind: output, shape index: {}]  }
   0x1   :  { %v17_v0 = vld [vmem:[%s457_s1] sm:$0xff]  ;;  %v18_v1 = vld [vmem:[%s457_s1 + $0x8] sm:$0xff]  ;;  %v19_v2 = vld [vmem:[%s457_s1 + $0x10] sm:$0xff] }
   0x2   :  { %v284_v3 = vpack.c.bf16 %v18_v1, %v17_v0  ;;  %v20_v4 = vld [vmem:[%s457_s1 + $0x18] sm:$0xff]  ;;  %v15_v5 = vld [vmem:[%s456_s0] sm:$0xff]  ;;  %v104_v8 = vld [vmem:[%s458_s2 + $0x8] sm:$0xff] }
   0x3   :  { %v288_v6 = vpack.c.bf16 %v20_v4, %v19_v2  ;;  %246 = vmatprep.mubr.msk.f32.mxu0 %vm21_vm0, %v15_v5  ;;  %v103_v7 = vld [vmem:[%s458_s2] sm:$0xff]  ;;  %v105_v9 = vld [vmem:[%s458_s2 + $0x10] sm:$0xff]  ;;  %v106_v11 = vld [vmem:[%s458_s2 + $0x18] sm:$0xff] }
   0x4   :  { %285 = vmatprep.subr.bf16.mxu0 %v284_v3  ;;  %v292_v10 = vpack.c.bf16 %v104_v8, %v103_v7  ;;  %v296_v12 = vpack.c.bf16 %v106_v11, %v105_v9  ;;  %v107_v13 = vld [vmem:[%s458_s2 + $0x20] sm:$0xff]  ;;  %v108_v14 = vld [vmem:[%s458_s2 + $0x28] sm:$0xff] }
   0x5   :  { %287 = vmatpush3.bf16.msra.mxu0 %v284_v3  ;;  %v300_v15 = vpack.c.bf16 %v108_v14, %v107_v13 }
   0x6   :  { %289 = vmatprep.subr.bf16.mxu0 %v288_v6  ;;  %293 = vmatprep.subr.bf16.mxu1 %v292_v10 }
   0x7   :  { %295 = vmatpush3.bf16.msra.mxu1 %v292_v10 }
   0x8   :  { %297 = vmatprep.subr.bf16.mxu1 %v296_v12 }
   0x9   :  { %8 = vsyncpa [#allocation3], 0  ;;  %291 = vmatpush3.bf16.msra.mxu0 %v288_v6  ;;  %v16_v16 = vld [vmem:[%s456_s0 + $0x8] sm:$0xff]  ;;  %v109_v17 = vld [vmem:[%s458_s2 + $0x30] sm:$0xff]  ;;  %s351_s27 = smov [#allocation2]  }
   0xa   :  { %v110_v18 = vld [vmem:[%s458_s2 + $0x38] sm:$0xff]  ;;  %v111_v20 = vld [vmem:[%s458_s2 + $0x40] sm:$0xff]  ;;  %v112_v21 = vld [vmem:[%s458_s2 + $0x48] sm:$0xff]  ;;  %s201_s1 = sshll.u32 %s351_s27, 4  ;;  %s202_s1 = int_to_ptr.vmem [resolvable:$true] %s201_s1 }
   0xb   :  { %299 = vmatpush3.bf16.msra.mxu1 %v296_v12  ;;  %v304_v19 = vpack.c.bf16 %v110_v18, %v109_v17  ;;  %v308_v22 = vpack.c.bf16 %v112_v21, %v111_v20  ;;  %v113_v23 = vld [vmem:[%s458_s2 + $0x50] sm:$0xff]  ;;  %v114_v24 = vld [vmem:[%s458_s2 + $0x58] sm:$0xff]  ;;  %v115_v26 = vld [vmem:[%s458_s2 + $0x60] sm:$0xff]  ;;  %p332_p1 = scmp.lt.s32.totalorder %s202_s1, %s202_s1 }
   0xc   :  { %247 = vmatmul.mubr.msk.f32.vlgmr.msra.gmra.mrb[0].mxu0 %vm21_vm0, %v16_v16  ;;  %301 = vmatprep.subr.bf16.mxu1 %v300_v15  ;;  %v312_v25 = vpack.c.bf16 %v114_v24, %v113_v23  ;;  %v116_v27 = vld [vmem:[%s458_s2 + $0x68] sm:$0xff]  ;;  %v117_v29 = vld [vmem:[%s458_s2 + $0x70] sm:$0xff]  ;;  %v118_v30 = vld [vmem:[%s458_s2 + $0x78] sm:$0xff]  ;;  %s327_s2 = scalar_lea.vmem %s202_s1, 256 }
   0xd   :  { %v316_v28 = vpack.c.bf16 %v116_v27, %v115_v26  ;;  %v320_v31 = vpack.c.bf16 %v118_v30, %v117_v29  ;;  %p328_p0 = scmp.ne.s32.totalorder %s202_s1, %s327_s2  ;;  %p333_p2 = scmp.lt.s32.totalorder %s327_s2, %s327_s2 }
   0xf   :  { %303 = vmatpush3.bf16.msra.mxu1 %v300_v15  ;;  %p334_p3 = por %p333_p2, %p332_p1 }
  0x10   :  { %305 = vmatprep.subr.bf16.mxu1 %v304_v19 }
  0x11   :  { %p335_p4 = pnand %p334_p3, %p328_p0 }
  0x13   :  { %307 = vmatpush3.bf16.msra.mxu1 %v304_v19 }
  0x14   :  { %309 = vmatprep.subr.bf16.mxu1 %v308_v22 }
  0x17   :  { %311 = vmatpush3.bf16.msra.mxu1 %v308_v22 }
  0x18   :  { %313 = vmatprep.subr.bf16.mxu1 %v312_v25 }
  0x1b   :  { %315 = vmatpush3.bf16.msra.mxu1 %v312_v25 }
  0x1c   :  { %317 = vmatprep.subr.bf16.mxu1 %v316_v28 }
  0x1f   :  { %319 = vmatpush3.bf16.msra.mxu1 %v316_v28 }
  0x20   :  { %321 = vmatprep.subr.bf16.mxu1 %v320_v31 }
  0x23   :  { %323 = vmatpush3.bf16.msra.mxu1 %v320_v31 }
  0xdf   :  { %v248_v32 = vpop.f32.mrb[0].mxu0 }
  0xe0   :  { %v94_v33 = vpop.f32.mrb[1].mxu0 }
  0xe1   :  { %281 = vmatprep.mubr.f32.mxu1 %v94_v33 }
  0xe2   :  { %282 = vmatmul.mubr.f32.vlgmr.msra.gmra.mrb[0].mxu1 %v248_v32 }
 0x1b5   :  { %v283_v34 = vpop.f32.mrb[0].mxu1 }
 0x1b6   :  { %195 = vst.msk [vmem:[#allocation2 + $0x8] sm:$0xff] %vm21_vm0, %v283_v34  ;;  %v185_v35 = vpop.f32.mrb[1].mxu1 }
 0x1b7   :  { %194 = vst.msk [vmem:[#allocation2] sm:$0xff] %vm21_vm0, %v185_v35 }
 0x1b8   :  { %338 = shalt.err (!%p335_p4)
}
 0x1b9   :  { %s339_s30 = scalar_lea.hbm %s459_s3, 256 }
 0x1ba   :  { %p340_p5 = scmp.ne.s32.totalorder %s459_s3, %s339_s30  ;;  %p343_p6 = scmp.lt.u32.totalorder %s339_s30, %s459_s3 }
 0x1bc   :  { %p345_p7 = pnand %p343_p6, %p340_p5 }
 0x1be   :  { %348 = shalt.err (!%p345_p7)
}
 0x1bf   :  { %s352_s8 = smov 128   ;;  %s353_s9 = smov 8  }
 0x1c0   :  { %207 = dma.vmem_to_hbm [thread:$0]  %s202_s1, 256, %s459_s3, [#allocation3], %s352_s8, %s352_s8, %s353_s9  }
 0x1c1   :  { %349 = dma.done.wait [#allocation3], 256  }
 0x1c2   :  { %350 = vsyncadd [#allocation3], 4294967040 }
 0x1c3   :  { %211 = vsyncpa [#allocation3], 1 }

</bundles_post_ra>
